<compile_context>
chip_gen: v7x
topology: tpu7x:2x2x1
jax: 0.10.0
libtpu: 0.0.40
codegen_flags: <defaults>
</compile_context>

<pallas_src>
import math

import jax
import jax.numpy as jnp
from jax.experimental import pallas as pl
from jax.experimental.pallas import tpu as pltpu


_LANES = 128
_TARGET_BLOCK_BYTES = 4 * 1024 * 1024   # ~4 MiB per block per operand
_FLOOR_BLOCK_BYTES = 1 * 1024 * 1024    # never shrink a block below ~1 MiB


def _solve_threshold() -> float:
    """Solve 1.5*tanh(T) + 0.5*tanh(-3T) = 0.5 by bisection (once, at import)."""
    def f(x):
        return 1.5 * math.tanh(x) + 0.5 * math.tanh(-3.0 * x) - 0.5
    lo, hi = 0.0, 2.0
    for _ in range(100):
        mid = 0.5 * (lo + hi)
        if f(mid) < 0.0:
            lo = mid
        else:
            hi = mid
    return 0.5 * (lo + hi)


_THRESHOLD = _solve_threshold()   # ~= 0.7946786


def _ternary_tanh_kernel(x_ref, o_ref):
    # Compare in f32 so low-precision inputs don't quantize the decision
    # boundary; VPU has huge slack in this HBM-bound kernel so the cast is free.
    x = x_ref[...].astype(jnp.float32)
    pos = (x >= _THRESHOLD).astype(jnp.float32)
    neg = (x <= -_THRESHOLD).astype(jnp.float32)
    o_ref[...] = (pos - neg).astype(o_ref.dtype)


def _sublane_align(dtype) -> int:
    # Native second-minor tile: 8 rows for 4-byte, 16 for 2-byte, 32 for 1-byte.
    itemsize = jnp.dtype(dtype).itemsize
    return max(8, 32 // max(1, itemsize))


def _round_up(v: int, m: int) -> int:
    return ((v + m - 1) // m) * m


def _choose_block_rows(rows: int, align: int, itemsize: int) -> int:
    """Byte-based block: ~4 MiB target, ~1 MiB floor.  Split only enough to get
    >=2 grid steps (v7x has 2 TCs sharing HBM), never below the floor."""
    bytes_per_row = _LANES * itemsize
    target_rows = max(align, (_TARGET_BLOCK_BYTES // bytes_per_row) // align * align)
    floor_rows = max(align, (_FLOOR_BLOCK_BYTES // bytes_per_row) // align * align)

    block_rows = min(target_rows, _round_up(rows, align))
    if rows > floor_rows and pl.cdiv(rows, block_rows) < 2:
        half = _round_up(pl.cdiv(rows, 2), align)
        block_rows = max(floor_rows, min(block_rows, half))
    return block_rows


def _compiler_params():
    # 4 MiB block x (in + out) x 2 pipeline buffers = 16 MiB, well under this
    # limit.  32 MiB is <= physical VMEM on all of v5e/v6e/v7x.
    return pltpu.CompilerParams(
        dimension_semantics=("parallel",),
        vmem_limit_bytes=32 * 1024 * 1024,
    )


def _cost_estimate(n: int, itemsize: int):
    # Pure streaming op: read + write, a handful of VPU ops per element.
    return pl.CostEstimate(
        flops=5 * n,
        transcendentals=0,
        bytes_accessed=2 * n * itemsize,
    )


def ternary_tanh(x: jax.Array) -> jax.Array:
    """TernaryTanh forward, elementwise, any shape / float dtype."""
    orig_shape = x.shape
    orig_dtype = x.dtype

    n = x.size
    if n == 0:
        return x

    itemsize = jnp.dtype(orig_dtype).itemsize
    align = _sublane_align(orig_dtype)

    if n % _LANES == 0:
        # Lane-dense 2D view; Pallas masks the partial last block on the row
        # (grid) axis, so no pad/slice HBM passes are needed.
        rows = n // _LANES
        block_rows = _choose_block_rows(rows, align, itemsize)
        x2d = jnp.reshape(x, (rows, _LANES))
        out2d = pl.pallas_call(
            _ternary_tanh_kernel,
            out_shape=jax.ShapeDtypeStruct((rows, _LANES), orig_dtype),
            grid_spec=pltpu.PrefetchScalarGridSpec(
                num_scalar_prefetch=0,
                grid=(pl.cdiv(rows, block_rows),),
                in_specs=[pl.BlockSpec((block_rows, _LANES), lambda i: (i, 0))],
                out_specs=pl.BlockSpec((block_rows, _LANES), lambda i: (i, 0)),
            ),
            compiler_params=_compiler_params(),
            cost_estimate=_cost_estimate(n, itemsize),
        )(x2d)
        return jnp.reshape(out2d, orig_shape)

    # Truly ragged size: 1D pallas_call over the flat array.  Block is a
    # multiple of 128 lanes; the partial final block is masked by Pallas, so we
    # never pad or slice the whole tensor (no extra HBM passes).
    rows = pl.cdiv(n, _LANES)
    block_rows = _choose_block_rows(rows, align, itemsize)
    block_elems = block_rows * _LANES
    x1d = jnp.reshape(x, (-1,))
    out1d = pl.pallas_call(
        _ternary_tanh_kernel,
        out_shape=jax.ShapeDtypeStruct((n,), orig_dtype),
        grid_spec=pltpu.PrefetchScalarGridSpec(
            num_scalar_prefetch=0,
            grid=(pl.cdiv(n, block_elems),),
            in_specs=[pl.BlockSpec((block_elems,), lambda i: (i,))],
            out_specs=pl.BlockSpec((block_elems,), lambda i: (i,)),
        ),
        compiler_params=_compiler_params(),
        cost_estimate=_cost_estimate(n, itemsize),
    )(x1d)
    return jnp.reshape(out1d, orig_shape)


def _reference(x):
    return jnp.round(1.5 * jnp.tanh(x) + 0.5 * jnp.tanh(-3.0 * x))


def _check(x, label):
    y = jax.block_until_ready(ternary_tanh(x))
    assert y.shape == x.shape and y.dtype == x.dtype, label
    y_ref = _reference(x)
    # Outputs may legitimately differ from the tanh+round reference only for
    # inputs sitting (to fp precision) exactly on the +/-T decision boundary.
    mismatch = y != y_ref
    near_boundary = jnp.abs(jnp.abs(x) - _THRESHOLD) < 1e-4
    assert bool(jnp.all(jnp.logical_or(~mismatch, near_boundary))), (
        f"mismatch vs reference ({label})")


if __name__ == "__main__":
    key = jax.random.PRNGKey(0)

    # Main case (NCHW-ish, n % 128 == 0): batch=2, channels=4, 16x16 spatial.
    x = jax.random.normal(key, (2, 4, 16, 16), dtype=jnp.float32) * 2.0
    _check(x, "aligned")

    # 128-aligned but not 8*128-aligned rows (exercises partial 2D block).
    x_p = jax.random.normal(jax.random.PRNGKey(1), (4, 160), dtype=jnp.float32) * 2.0
    _check(x_p, "partial-2d")

    # Truly ragged size (exercises the masked 1D path, no pad/slice).
    x_r = jax.random.normal(jax.random.PRNGKey(2), (3, 5, 7), dtype=jnp.float32) * 2.0
    _check(x_r, "ragged-1d")

    print("KERNEL_OK")
</pallas_src>

<mosaic_0001>
module attributes {stable_mosaic.version = 11 : i64} {
  func.func @_ternary_tanh_kernel(%arg0: i32, %arg1: memref<16x128xf32, #tpu.memory_space<vmem>>, %arg2: memref<16x128xf32, #tpu.memory_space<vmem>>) attributes {dimension_semantics = [#tpu.dimension_semantics<parallel>], iteration_bounds = array<i64: 1>, scalar_prefetch = 0 : i64, scratch_operands = 0 : i64, tpu.core_type = #tpu.core_type<tc>, window_params = [{transform_indices = @transform_0, window_bounds = array<i64: 16, 128>}, {transform_indices = @transform_1, window_bounds = array<i64: 16, 128>}]} {
    %c0 = arith.constant 0 : index
    %c0_0 = arith.constant 0 : index
    %0 = vector.load %arg1[%c0, %c0_0] : memref<16x128xf32, #tpu.memory_space<vmem>>, vector<16x128xf32>
    %cst = arith.constant 0.794675946 : f32
    %1 = vector.broadcast %cst : f32 to vector<16x128xf32>
    %2 = arith.cmpf oge, %0, %1 : vector<16x128xf32>
    %3 = arith.extui %2 : vector<16x128xi1> to vector<16x128xi32>
    %4 = arith.sitofp %3 : vector<16x128xi32> to vector<16x128xf32>
    %cst_1 = arith.constant -0.794675946 : f32
    %5 = vector.broadcast %cst_1 : f32 to vector<16x128xf32>
    %6 = arith.cmpf ole, %0, %5 : vector<16x128xf32>
    %7 = arith.extui %6 : vector<16x128xi1> to vector<16x128xi32>
    %8 = arith.sitofp %7 : vector<16x128xi32> to vector<16x128xf32>
    %9 = arith.subf %4, %8 : vector<16x128xf32>
    %c0_2 = arith.constant 0 : index
    %c0_3 = arith.constant 0 : index
    %10 = vector.load %arg2[%c0_2, %c0_3] : memref<16x128xf32, #tpu.memory_space<vmem>>, vector<16x128xf32>
    tpu.vector_store %arg2[%c0_2, %c0_3], %9 {strides = array<i32>} : memref<16x128xf32, #tpu.memory_space<vmem>>, vector<16x128xf32>,
    return
  }
  func.func @transform_0(%arg0: i32) -> (i32, i32) {
    %c0_i32 = arith.constant 0 : i32
    %c0_i32_0 = arith.constant 0 : i32
    return %arg0, %c0_i32 : i32, i32
  }
  func.func @transform_1(%arg0: i32) -> (i32, i32) {
    %c0_i32 = arith.constant 0 : i32
    %c0_i32_0 = arith.constant 0 : i32
    return %arg0, %c0_i32 : i32, i32
  }
}

</mosaic_0001>

<bundles_post_ra>
// kernel: tpu_custom_call.1
= control target key start
LH: loop header
LB: loop body
LE: loop exit
PB: predicated region body
PF: predicated region fallthrough
CT: control target
= control target key end

     0   :  { %6 = vsyncpa [#allocation3], 0  ;;  %s160_s0 = inlined_call_operand.hbm [shape: f32[16,128], index: 0, kind: input, shape index: {}]   ;;  %s161_s1 = inlined_call_operand.hbm [shape: f32[16,128], index: 1, kind: output, shape index: {}]  }
   0x1   :  { %7 = vsyncpa [#allocation4], 0  ;;  %s115_s6 = smov [#allocation2]   ;;  %s67_s10 = scalar_lea.hbm %s160_s0, 256 }
   0x2   :  { %s13_s7 = sshll.u32 %s115_s6, 4  ;;  %p68_p0 = scmp.ne.s32.totalorder %s160_s0, %s67_s10  ;;  %s14_s7 = int_to_ptr.vmem [resolvable:$true] %s13_s7 }
   0x3   :  { %p71_p1 = scmp.lt.u32.totalorder %s67_s10, %s160_s0 }
   0x5   :  { %p73_p2 = pnand %p71_p1, %p68_p0 }
   0x7   :  { %76 = shalt.err (!%p73_p2)
}
   0x8   :  { %s77_s15 = scalar_lea.vmem %s14_s7, 256  ;;  %p82_p4 = scmp.lt.s32.totalorder %s14_s7, %s14_s7 }
   0x9   :  { %p78_p3 = scmp.ne.s32.totalorder %s14_s7, %s77_s15  ;;  %p83_p5 = scmp.lt.s32.totalorder %s77_s15, %s77_s15 }
   0xb   :  { %p84_p6 = por %p83_p5, %p82_p4 }
   0xd   :  { %p85_p7 = pnand %p84_p6, %p78_p3 }
   0xf   :  { %88 = shalt.err (!%p85_p7)
}
  0x10   :  { %s116_s16 = smov 128   ;;  %s117_s17 = smov 8  }
  0x11   :  { %19 = dma.hbm_to_vmem [thread:$0]  %s160_s0, 256, %s14_s7, [#allocation3], %s116_s16, %s116_s16, %s117_s17  }
  0x12   :  { %111 = dma.done.wait [#allocation3], 256  }
  0x13   :  { %112 = vsyncadd [#allocation3], 4294967040  ;;  %v23_v0 = vld [vmem:[#allocation2] sm:$0xff]  ;;  %v24_v1 = vld [vmem:[#allocation2 + $0x8] sm:$0xff]  ;;  %s118_s20 = smov [#allocation5]   ;;  %v119_v2 = vmov 0.0  }
  0x14   :  { %s46_s21 = sshll.u32 %s118_s20, 4  ;;  %vm25_vm0 = vcmp.ge.f32.partialorder %v23_v0, 0.79467595  ;;  %vm31_vm1 = vcmp.le.f32.partialorder %v23_v0, -0.79467595  ;;  %s47_s21 = int_to_ptr.vmem [resolvable:$true] %s46_s21 }
  0x15   :  { %vm26_vm2 = vcmp.ge.f32.partialorder %v24_v1, 0.79467595  ;;  %v58_v3 = vsel %vm25_vm0, 1.0, %v119_v2  ;;  %v60_v4 = vsel %vm31_vm1, 1.0, %v119_v2  ;;  %vm32_vm3 = vcmp.le.f32.partialorder %v24_v1, -0.79467595  ;;  %p94_p9 = scmp.lt.s32.totalorder %s47_s21, %s47_s21 }
  0x16   :  { %v59_v5 = vsel %vm26_vm2, 1.0, %v119_v2  ;;  %v37_v6 = vsub.f32 %v58_v3, %v60_v4  ;;  %v61_v7 = vsel %vm32_vm3, 1.0, %v119_v2  ;;  %s89_s0 = scalar_lea.vmem %s47_s21, 256 }
  0x17   :  { %v38_v8 = vsub.f32 %v59_v5, %v61_v7  ;;  %p90_p8 = scmp.ne.s32.totalorder %s47_s21, %s89_s0  ;;  %p95_p10 = scmp.lt.s32.totalorder %s89_s0, %s89_s0 }
  0x18   :  { %39 = vst [vmem:[#allocation5] sm:$0xff] %v37_v6 }
  0x19   :  { %40 = vst [vmem:[#allocation5 + $0x8] sm:$0xff] %v38_v8  ;;  %p96_p11 = por %p95_p10, %p94_p9 }
  0x1b   :  { %p97_p12 = pnand %p96_p11, %p90_p8 }
  0x1d   :  { %100 = shalt.err (!%p97_p12)
}
  0x1e   :  { %s101_s24 = scalar_lea.hbm %s161_s1, 256 }
  0x1f   :  { %p102_p13 = scmp.ne.s32.totalorder %s161_s1, %s101_s24  ;;  %p105_p0 = scmp.lt.u32.totalorder %s101_s24, %s161_s1 }
  0x21   :  { %p107_p1 = pnand %p105_p0, %p102_p13 }
  0x23   :  { %110 = shalt.err (!%p107_p1)
}
  0x24   :  { %52 = dma.vmem_to_hbm [thread:$0]  %s47_s21, 256, %s161_s1, [#allocation4], %s116_s16, %s116_s16, %s117_s17  }
  0x25   :  { %113 = dma.done.wait [#allocation4], 256  }
  0x26   :  { %114 = vsyncadd [#allocation4], 4294967040 }
  0x27   :  { %56 = vsyncpa [#allocation3], 1 }
  0x28   :  { %57 = vsyncpa [#allocation4], 1 }

</bundles_post_ra>
